<compile_context>
chip_gen: v5e
topology: v5e:2x2
jax: 0.10.0
libtpu: 0.0.40
codegen_flags: <defaults>
</compile_context>

<pallas_src>
import functools
import math

import jax
import jax.numpy as jnp
from jax import lax
from jax.experimental import pallas as pl
from jax.experimental.pallas import tpu as pltpu

# Large negative finite mask value (avoids -inf arithmetic in the online softmax).
MASK_VALUE = -0.7 * float(jnp.finfo(jnp.float32).max)
COMPUTE_DTYPE = jnp.bfloat16  # MXU operand dtype (f32 accumulation everywhere)


# ---------------------------------------------------------------------------
# Pre-pass: fused Q/K/V projection (hoisted out of the attention loop).
# ---------------------------------------------------------------------------
def qkv_proj_kernel(x_ref, wq_ref, wk_ref, wv_ref, q_ref, k_ref, v_ref, *, sm_scale):
    # x_ref: (1, tt, C); w*_ref: (C, H); outputs: (1, tt, H) in COMPUTE_DTYPE.
    x = x_ref[0].astype(COMPUTE_DTYPE)
    wq = wq_ref[...].astype(COMPUTE_DTYPE)
    wk = wk_ref[...].astype(COMPUTE_DTYPE)
    wv = wv_ref[...].astype(COMPUTE_DTYPE)
    q = jnp.dot(x, wq, preferred_element_type=jnp.float32) * sm_scale
    q_ref[0] = q.astype(q_ref.dtype)
    k_ref[0] = jnp.dot(x, wk, preferred_element_type=jnp.float32).astype(k_ref.dtype)
    v_ref[0] = jnp.dot(x, wv, preferred_element_type=jnp.float32).astype(v_ref.dtype)


# ---------------------------------------------------------------------------
# Flash attention over a flattened lower-triangle (b, step) grid.
# ---------------------------------------------------------------------------
def flash_kernel(qi_ids_ref, ki_ids_ref, kmax_ids_ref,   # scalar-prefetch (SMEM)
                 q_ref, k_ref, v_ref, o_ref,              # tiles (VMEM)
                 m_sc, l_sc, acc_sc,                       # scratch (VMEM)
                 *, block_q, block_k):
    step = pl.program_id(1)
    qi = qi_ids_ref[step]
    ki = ki_ids_ref[step]
    kmax = kmax_ids_ref[step]

    @pl.when(ki == 0)
    def _init():
        m_sc[...] = jnp.full_like(m_sc, MASK_VALUE)
        l_sc[...] = jnp.zeros_like(l_sc)
        acc_sc[...] = jnp.zeros_like(acc_sc)

    def _attn_step(apply_mask):
        q = q_ref[0]                                   # (tq, H) bf16, already scaled
        k = k_ref[0]                                   # (tk, H) bf16
        # Scores: contract the head dim directly (no explicit k.T / XLU pass).
        s = lax.dot_general(q, k, dimension_numbers=(((1,), (1,)), ((), ())),
                            preferred_element_type=jnp.float32)      # (tq, tk) f32
        if apply_mask:
            offs = qi * block_q - ki * block_k
            row = lax.broadcasted_iota(jnp.int32, (block_q, block_k), 0) + offs
            col = lax.broadcasted_iota(jnp.int32, (block_q, block_k), 1)
            s = jnp.where(col <= row, s, MASK_VALUE)
        # Online softmax update (all f32 elementwise math).
        m_prev = m_sc[...]
        m_new = jnp.maximum(m_prev, jnp.max(s, axis=-1, keepdims=True))
        alpha = jnp.exp(m_prev - m_new)
        p = jnp.exp(s - m_new)
        l_sc[...] = alpha * l_sc[...] + jnp.sum(p, axis=-1, keepdims=True)
        acc_sc[...] = alpha * acc_sc[...] + jnp.dot(
            p.astype(v_ref.dtype), v_ref[0], preferred_element_type=jnp.float32)
        m_sc[...] = m_new

    # Only diagonal-straddling tiles need the causal mask; interior tiles skip it.
    needs_mask = (ki + 1) * block_k - 1 > qi * block_q

    @pl.when(needs_mask)
    def _masked():
        _attn_step(True)

    @pl.when(jnp.logical_not(needs_mask))
    def _unmasked():
        _attn_step(False)

    @pl.when(ki == kmax)
    def _finalize():
        inv_l = pl.reciprocal(l_sc[...], approx=True)
        o_ref[0] = (acc_sc[...] * inv_l).astype(o_ref.dtype)


# ---------------------------------------------------------------------------
# Wrapper
# ---------------------------------------------------------------------------
def head_forward(x, w_key, w_query, w_value, *, block_q=128, block_k=256):
    """x: (B, T, C); w_*: (C, H). Returns (B, T, H) in x.dtype (eval-mode Head)."""
    B, T, C = x.shape
    H = w_key.shape[1]
    sm_scale = float(C) ** (-0.5)          # module scales by embedding dim C

    tq = min(block_q, T)
    tk = min(block_k, T)
    assert T % tq == 0 and T % tk == 0, "T must be divisible by the block sizes"

    # ---- 1) Q/K/V projection pre-pass (one pass over x, bf16 outputs) ----
    tt = min(256, T)
    assert T % tt == 0
    q, k, v = pl.pallas_call(
        functools.partial(qkv_proj_kernel, sm_scale=sm_scale),
        out_shape=(jax.ShapeDtypeStruct((B, T, H), COMPUTE_DTYPE),
                   jax.ShapeDtypeStruct((B, T, H), COMPUTE_DTYPE),
                   jax.ShapeDtypeStruct((B, T, H), COMPUTE_DTYPE)),
        grid_spec=pltpu.PrefetchScalarGridSpec(
            num_scalar_prefetch=0,
            grid=(B, T // tt),
            in_specs=[
                pl.BlockSpec((1, tt, C), lambda b, t: (b, t, 0)),   # x tile
                pl.BlockSpec((C, H), lambda b, t: (0, 0)),          # Wq (resident)
                pl.BlockSpec((C, H), lambda b, t: (0, 0)),          # Wk (resident)
                pl.BlockSpec((C, H), lambda b, t: (0, 0)),          # Wv (resident)
            ],
            out_specs=[
                pl.BlockSpec((1, tt, H), lambda b, t: (b, t, 0)),
                pl.BlockSpec((1, tt, H), lambda b, t: (b, t, 0)),
                pl.BlockSpec((1, tt, H), lambda b, t: (b, t, 0)),
            ],
        ),
        compiler_params=pltpu.CompilerParams(
            dimension_semantics=("parallel", "parallel")),
    )(x, w_query, w_key, w_value)

    # ---- 2) Flattened lower-triangle schedule (only visible blocks) ----
    nq = T // tq
    qi_list, ki_list, kmax_list = [], [], []
    for qi_blk in range(nq):
        kmax_blk = ((qi_blk + 1) * tq - 1) // tk      # last KV block needed by this row
        for ki_blk in range(kmax_blk + 1):
            qi_list.append(qi_blk)
            ki_list.append(ki_blk)
            kmax_list.append(kmax_blk)
    qi_ids = jnp.asarray(qi_list, dtype=jnp.int32)
    ki_ids = jnp.asarray(ki_list, dtype=jnp.int32)
    kmax_ids = jnp.asarray(kmax_list, dtype=jnp.int32)
    num_steps = len(qi_list)

    kernel = functools.partial(flash_kernel, block_q=tq, block_k=tk)

    out = pl.pallas_call(
        kernel,
        out_shape=jax.ShapeDtypeStruct((B, T, H), x.dtype),
        grid_spec=pltpu.PrefetchScalarGridSpec(
            num_scalar_prefetch=3,
            grid=(B, num_steps),
            in_specs=[
                pl.BlockSpec((1, tq, H), lambda b, s, qi, ki, km: (b, qi[s], 0)),  # q
                pl.BlockSpec((1, tk, H), lambda b, s, qi, ki, km: (b, ki[s], 0)),  # k
                pl.BlockSpec((1, tk, H), lambda b, s, qi, ki, km: (b, ki[s], 0)),  # v
            ],
            out_specs=pl.BlockSpec((1, tq, H), lambda b, s, qi, ki, km: (b, qi[s], 0)),
            scratch_shapes=[
                pltpu.VMEM((tq, 1), jnp.float32),   # running max m
                pltpu.VMEM((tq, 1), jnp.float32),   # running denom l
                pltpu.VMEM((tq, H), jnp.float32),   # f32 output accumulator
            ],
        ),
        compiler_params=pltpu.CompilerParams(
            dimension_semantics=("parallel", "arbitrary")),
    )(qi_ids, ki_ids, kmax_ids, q, k, v)
    return out


def head_reference(x, w_key, w_query, w_value):
    """Pure-JAX reference mirroring the PyTorch forward (eval mode)."""
    B, T, C = x.shape
    k = x @ w_key
    q = x @ w_query
    v = x @ w_value
    wei = (q @ jnp.swapaxes(k, -2, -1)) * (C ** -0.5)
    tril = jnp.tril(jnp.ones((T, T)))
    wei = jnp.where(tril == 0, -jnp.inf, wei)
    wei = jax.nn.softmax(wei, axis=-1)
    return wei @ v


if __name__ == "__main__":
    # Small shapes consistent with the module: batch=2, block_size(T)=8,
    # n_embed(C)=32, head_size(H)=16.  Eval mode (dropout = identity).
    B, T, C, H = 2, 8, 32, 16

    key = jax.random.PRNGKey(0)
    kx, kk, kq, kv = jax.random.split(key, 4)

    bound = 1.0 / math.sqrt(C)
    x = jax.random.normal(kx, (B, T, C), dtype=jnp.float32)
    w_key = jax.random.uniform(kk, (C, H), jnp.float32, -bound, bound)
    w_query = jax.random.uniform(kq, (C, H), jnp.float32, -bound, bound)
    w_value = jax.random.uniform(kv, (C, H), jnp.float32, -bound, bound)

    out = jax.block_until_ready(head_forward(x, w_key, w_query, w_value))
    ref = head_reference(x, w_key, w_query, w_value)
    assert out.shape == (B, T, H)
    assert jnp.allclose(out, ref, atol=2e-2, rtol=2e-2), "mismatch vs reference (small)"

    # Longer sequence exercises the flattened lower-triangle grid: multiple
    # query rows, interior (unmasked) tiles, diagonal (masked) tiles, and
    # init/finalize transitions.  tq=128, tk=256 -> 6 steps instead of 8.
    T2 = 512
    x2 = jax.random.normal(jax.random.PRNGKey(1), (B, T2, C), dtype=jnp.float32)
    out2 = jax.block_until_ready(head_forward(x2, w_key, w_query, w_value))
    ref2 = head_reference(x2, w_key, w_query, w_value)
    assert out2.shape == (B, T2, H)
    assert jnp.allclose(out2, ref2, atol=2e-2, rtol=2e-2), "mismatch vs reference (tiled)"

    print("KERNEL_OK")
</pallas_src>

<mosaic_0001>
module attributes {stable_mosaic.version = 11 : i64} {
  func.func @qkv_proj_kernel(%arg0: i32, %arg1: i32, %arg2: memref<1x8x32xf32, #tpu.memory_space<vmem>>, %arg3: memref<32x16xf32, #tpu.memory_space<vmem>>, %arg4: memref<32x16xf32, #tpu.memory_space<vmem>>, %arg5: memref<32x16xf32, #tpu.memory_space<vmem>>, %arg6: memref<1x8x16xbf16, #tpu.memory_space<vmem>>, %arg7: memref<1x8x16xbf16, #tpu.memory_space<vmem>>, %arg8: memref<1x8x16xbf16, #tpu.memory_space<vmem>>) attributes {dimension_semantics = [#tpu.dimension_semantics<parallel>, #tpu.dimension_semantics<parallel>], iteration_bounds = array<i64: 2, 1>, scalar_prefetch = 0 : i64, scratch_operands = 0 : i64, tpu.core_type = #tpu.core_type<tc>, window_params = [{transform_indices = @transform_0, window_bounds = array<i64: 1, 8, 32>}, {pipeline_mode = #tpu.pipeline_mode<synchronous>, transform_indices = @transform_1, window_bounds = array<i64: 32, 16>}, {pipeline_mode = #tpu.pipeline_mode<synchronous>, transform_indices = @transform_2, window_bounds = array<i64: 32, 16>}, {pipeline_mode = #tpu.pipeline_mode<synchronous>, transform_indices = @transform_3, window_bounds = array<i64: 32, 16>}, {transform_indices = @transform_4, window_bounds = array<i64: 1, 8, 16>}, {transform_indices = @transform_5, window_bounds = array<i64: 1, 8, 16>}, {transform_indices = @transform_6, window_bounds = array<i64: 1, 8, 16>}]} {
    %c0 = arith.constant 0 : index
    %c0_0 = arith.constant 0 : index
    %c0_1 = arith.constant 0 : index
    %0 = vector.load %arg2[%c0, %c0_0, %c0_1] : memref<1x8x32xf32, #tpu.memory_space<vmem>>, vector<1x8x32xf32>
    %1 = vector.shape_cast %0 : vector<1x8x32xf32> to vector<8x32xf32>
    %2 = arith.truncf %1 : vector<8x32xf32> to vector<8x32xbf16>
    %c0_2 = arith.constant 0 : index
    %c0_3 = arith.constant 0 : index
    %3 = vector.load %arg3[%c0_2, %c0_3] : memref<32x16xf32, #tpu.memory_space<vmem>>, vector<32x16xf32>
    %4 = arith.truncf %3 : vector<32x16xf32> to vector<32x16xbf16>
    %c0_4 = arith.constant 0 : index
    %c0_5 = arith.constant 0 : index
    %5 = vector.load %arg4[%c0_4, %c0_5] : memref<32x16xf32, #tpu.memory_space<vmem>>, vector<32x16xf32>
    %6 = arith.truncf %5 : vector<32x16xf32> to vector<32x16xbf16>
    %c0_6 = arith.constant 0 : index
    %c0_7 = arith.constant 0 : index
    %7 = vector.load %arg5[%c0_6, %c0_7] : memref<32x16xf32, #tpu.memory_space<vmem>>, vector<32x16xf32>
    %8 = arith.truncf %7 : vector<32x16xf32> to vector<32x16xbf16>
    %cst = arith.constant dense<0.000000e+00> : vector<8x16xf32>
    %9 = tpu.matmul %2, %4, %cst {dimension_numbers = #tpu.dot_dimension_numbers<[1], [0], [0], [1], [0, 0, 1, 1], [], []>} : vector<8x32xbf16>, vector<32x16xbf16>, vector<8x16xf32> -> vector<8x16xf32>
    %cst_8 = arith.constant 0.176776692 : f32
    %10 = vector.broadcast %cst_8 : f32 to vector<8x16xf32>
    %11 = arith.mulf %9, %10 : vector<8x16xf32>
    %12 = arith.truncf %11 : vector<8x16xf32> to vector<8x16xbf16>
    %c0_9 = arith.constant 0 : index
    %c0_10 = arith.constant 0 : index
    %c0_11 = arith.constant 0 : index
    %13 = vector.load %arg6[%c0_9, %c0_10, %c0_11] : memref<1x8x16xbf16, #tpu.memory_space<vmem>>, vector<1x8x16xbf16>
    %14 = vector.shape_cast %13 : vector<1x8x16xbf16> to vector<8x16xbf16>
    %15 = vector.shape_cast %12 : vector<8x16xbf16> to vector<1x8x16xbf16>
    tpu.vector_store %arg6[%c0_9, %c0_10, %c0_11], %15 {strides = array<i32>} : memref<1x8x16xbf16, #tpu.memory_space<vmem>>, vector<1x8x16xbf16>,
    %cst_12 = arith.constant dense<0.000000e+00> : vector<8x16xf32>
    %16 = tpu.matmul %2, %6, %cst_12 {dimension_numbers = #tpu.dot_dimension_numbers<[1], [0], [0], [1], [0, 0, 1, 1], [], []>} : vector<8x32xbf16>, vector<32x16xbf16>, vector<8x16xf32> -> vector<8x16xf32>
    %17 = arith.truncf %16 : vector<8x16xf32> to vector<8x16xbf16>
    %c0_13 = arith.constant 0 : index
    %c0_14 = arith.constant 0 : index
    %c0_15 = arith.constant 0 : index
    %18 = vector.load %arg7[%c0_13, %c0_14, %c0_15] : memref<1x8x16xbf16, #tpu.memory_space<vmem>>, vector<1x8x16xbf16>
    %19 = vector.shape_cast %18 : vector<1x8x16xbf16> to vector<8x16xbf16>
    %20 = vector.shape_cast %17 : vector<8x16xbf16> to vector<1x8x16xbf16>
    tpu.vector_store %arg7[%c0_13, %c0_14, %c0_15], %20 {strides = array<i32>} : memref<1x8x16xbf16, #tpu.memory_space<vmem>>, vector<1x8x16xbf16>,
    %cst_16 = arith.constant dense<0.000000e+00> : vector<8x16xf32>
    %21 = tpu.matmul %2, %8, %cst_16 {dimension_numbers = #tpu.dot_dimension_numbers<[1], [0], [0], [1], [0, 0, 1, 1], [], []>} : vector<8x32xbf16>, vector<32x16xbf16>, vector<8x16xf32> -> vector<8x16xf32>
    %22 = arith.truncf %21 : vector<8x16xf32> to vector<8x16xbf16>
    %c0_17 = arith.constant 0 : index
    %c0_18 = arith.constant 0 : index
    %c0_19 = arith.constant 0 : index
    %23 = vector.load %arg8[%c0_17, %c0_18, %c0_19] : memref<1x8x16xbf16, #tpu.memory_space<vmem>>, vector<1x8x16xbf16>
    %24 = vector.shape_cast %23 : vector<1x8x16xbf16> to vector<8x16xbf16>
    %25 = vector.shape_cast %22 : vector<8x16xbf16> to vector<1x8x16xbf16>
    tpu.vector_store %arg8[%c0_17, %c0_18, %c0_19], %25 {strides = array<i32>} : memref<1x8x16xbf16, #tpu.memory_space<vmem>>, vector<1x8x16xbf16>,
    return
  }
  func.func @transform_0(%arg0: i32, %arg1: i32) -> (i32, i32, i32) {
    %c0_i32 = arith.constant 0 : i32
    %c0_i32_0 = arith.constant 0 : i32
    return %arg0, %arg1, %c0_i32 : i32, i32, i32
  }
  func.func @transform_1(%arg0: i32, %arg1: i32) -> (i32, i32) {
    %c0_i32 = arith.constant 0 : i32
    %c0_i32_0 = arith.constant 0 : i32
    %c0_i32_1 = arith.constant 0 : i32
    return %c0_i32, %c0_i32_0 : i32, i32
  }
  func.func @transform_2(%arg0: i32, %arg1: i32) -> (i32, i32) {
    %c0_i32 = arith.constant 0 : i32
    %c0_i32_0 = arith.constant 0 : i32
    %c0_i32_1 = arith.constant 0 : i32
    return %c0_i32, %c0_i32_0 : i32, i32
  }
  func.func @transform_3(%arg0: i32, %arg1: i32) -> (i32, i32) {
    %c0_i32 = arith.constant 0 : i32
    %c0_i32_0 = arith.constant 0 : i32
    %c0_i32_1 = arith.constant 0 : i32
    return %c0_i32, %c0_i32_0 : i32, i32
  }
  func.func @transform_4(%arg0: i32, %arg1: i32) -> (i32, i32, i32) {
    %c0_i32 = arith.constant 0 : i32
    %c0_i32_0 = arith.constant 0 : i32
    return %arg0, %arg1, %c0_i32 : i32, i32, i32
  }
  func.func @transform_5(%arg0: i32, %arg1: i32) -> (i32, i32, i32) {
    %c0_i32 = arith.constant 0 : i32
    %c0_i32_0 = arith.constant 0 : i32
    return %arg0, %arg1, %c0_i32 : i32, i32, i32
  }
  func.func @transform_6(%arg0: i32, %arg1: i32) -> (i32, i32, i32) {
    %c0_i32 = arith.constant 0 : i32
    %c0_i32_0 = arith.constant 0 : i32
    return %arg0, %arg1, %c0_i32 : i32, i32, i32
  }
}

</mosaic_0001>

<bundles_post_ra>
// kernel: tpu_custom_call.1
= control target key start
LH: loop header
LB: loop body
LE: loop exit
PB: predicated region body
PF: predicated region fallthrough
CT: control target
= control target key end

     0   :  { %s1037_s0 = inlined_call_operand.vmem [shape: f32[2,8,32], index: 0, kind: input, shape index: {}]   ;;  %s1038_s1 = inlined_call_operand.vmem [shape: f32[32,16], index: 1, kind: input, shape index: {}]   ;;  %s1039_s2 = inlined_call_operand.vmem [shape: f32[32,16], index: 2, kind: input, shape index: {}]   ;;  %s1040_s3 = inlined_call_operand.vmem [shape: f32[32,16], index: 3, kind: input, shape index: {}]   ;;  %s1041_s4 = inlined_call_operand.hbm [shape: bf16[2,8,16], index: 4, kind: output, shape index: {0}]   ;;  %s1042_s5 = inlined_call_operand.hbm [shape: bf16[2,8,16], index: 5, kind: output, shape index: {1}]   ;;  %s1043_s6 = inlined_call_operand.hbm [shape: bf16[2,8,16], index: 6, kind: output, shape index: {2}]  }
   0x1   :  { %1049 = sst [smem:[#allocation10_spill]] %s1037_s0 }
   0x2   :  { %1050 = sst [smem:[#allocation11_spill]] %s1038_s1 }
   0x3   :  { %1051 = sst [smem:[#allocation12_spill]] %s1039_s2 }
   0x4   :  { %12 = vsyncpa [#allocation3], 0 }
   0x5   :  { %14 = vsyncpa [#allocation3 + $0x1], 0 }
   0x6   :  { %15 = vsyncpa [#allocation5], 0 }
   0x7   :  { %17 = vsyncpa [#allocation5 + $0x1], 0  ;;  %s819_s21 = smov 0   ;;  %s821_s22 = smov 0  }
   0x8   :  { %s823_s23 = smov 0   ;;  %s825_s24 = smov 0  }
   0x9   :  { %s827_s25 = smov 0   ;;  %s829_s26 = smov 0  }
   0xa LB: > { %s559_s27 = sadd.s32 4294967295, %s782_s26   ;;  %s1044_s28 = sadd.s32 4294967294, %s782_s26   ;;  %s782_s26 = sphi %s829_s26, %s23_s26   ;;  %s778_s25 = sphi %s827_s25, %s1068_s25   ;;  %s774_s24 = sphi %s825_s24, %s1067_s24   ;;  %s770_s23 = sphi %s823_s23, %s1066_s23   ;;  %s766_s22 = sphi %s821_s22, %s1065_s22   ;;  %s762_s21 = sphi %s819_s21, %s1064_s21  }
   0xb   : > { %s35_s29 = sadd.s32 1, %s778_s25  ;;  %s135_s30 = sadd.s32 1, %s770_s23 }
   0xc   : > { %p37_p0 = scmp.ge.s32.totalorder %s35_s29, 2  ;;  %p145_p1 = scmp.ne.s32.totalorder %s770_s23, %s766_s22 }
   0xd   : > { %p146_p2 = scmp.eq.s32.totalorder %s559_s27, 1  ;;  %p151_p3 = scmp.ne.s32.totalorder %s766_s22, %s762_s21 }
   0xe   : > { %s1070_s29 = smov (%p37_p0, %s35_s29), 0  ;;  %p152_p5 = scmp.eq.s32.totalorder %s1044_s28, 1 }
   0xf   : > { %p861_p4 = por %p146_p2, %p145_p1  ;;  %s130_s8 = ssub.s32 %s778_s25, %s1070_s29 }
  0x10   : > { %p563_p6 = scmp.ge.s32.totalorder %s782_s26, 1  ;;  %p133_p7 = scmp.eq.s32.totalorder %s130_s8, 0 }
  0x11   : > { %p870_p8 = por %p152_p5, %p151_p3  ;;  %p245_p9 = scmp.lt.s32.totalorder %s782_s26, 3 }
  0x12   : > { %s876_s10 = scalar_select %p133_p7, %s770_s23, %s135_s30  }
  0x13   : > { %p246_p10 = pnand %p563_p6, %p245_p9 }
  0x15   : > { %249 = sbr.rel (%p246_p10) target bundleno = 203 (0xcb), region = 36 }
  0x1a   : > { %s1054_s1 = sld [smem:[#allocation11_spill]]  ;;  %p287_p11 = scmp.lt.s32.totalorder %s774_s24, 1  ;;  %v311_v5 = vld [vmem:[%s1040_s3 + $0x10] sm:$0xff]  ;;  %v312_v6 = vld [vmem:[%s1040_s3 + $0x18] sm:$0xff]  ;;  %v309_v14 = vld [vmem:[%s1040_s3] sm:$0xff]  ;;  %vm315_vm0 = vcmask 261120  }
  0x1b   : > { %s1055_s2 = sld [smem:[#allocation12_spill]]  ;;  %v314_v8 = vpack.c.bf16 %v312_v6, %v311_v5  ;;  %v310_v15 = vld [vmem:[%s1040_s3 + $0x8] sm:$0xff]  ;;  %s1045_s16 = sand.u32 1, %s766_s22   ;;  %vm334_vm1 = vcmask 125952  }
  0x1c   : > { %s288_s17 = scalar_select %p287_p11, %s774_s24, 1  ;;  %v313_v17 = vpack.c.bf16 %v310_v15, %v309_v14 }
  0x1d   : > { %357 = vmatpush.bf16.msra.mxu2 %v314_v8  ;;  %s1056_s0 = sld [smem:[#allocation10_spill]]  ;;  %s922_s18 = sshll.u32 %s1045_s16, 2 }
  0x1e   : > { %s567_s12 = sshll.u32 %s288_s17, 3  ;;  %s574_s17 = sshll.u32 %s774_s24, 2 }
  0x1f   : > { %s927_s19 = sand.u32 1, %s559_s27   ;;  %s403_s8 = scalar_lea.hbm %s1042_s5, %s574_s17 }
  0x20   : > { %v299_v0 = vld [vmem:[%s1054_s1 + $0x10] sm:$0xff]  ;;  %v300_v1 = vld [vmem:[%s1054_s1 + $0x18] sm:$0xff]  ;;  %v297_v9 = vld [vmem:[%s1054_s1] sm:$0xff]  ;;  %s388_s13 = scalar_lea.hbm %s1041_s4, %s574_s17  ;;  %s279_s14 = scalar_lea.vmem [#allocation4], %s922_s18 }
  0x21   : > { %v305_v2 = vld [vmem:[%s1055_s2 + $0x10] sm:$0xff]  ;;  %v302_v3 = vpack.c.bf16 %v300_v1, %v299_v0  ;;  %v306_v4 = vld [vmem:[%s1055_s2 + $0x18] sm:$0xff]  ;;  %v298_v10 = vld [vmem:[%s1054_s1 + $0x8] sm:$0xff]  ;;  %358 = vmatpush.bf16.msra.mxu2 %v313_v17  ;;  %s938_s28 = sshll.u32 %s403_s8, 4  ;;  %s1046_s24 = scalar_lea.vmem [#allocation2], %s922_s18  ;;  %s408_s28 = int_to_ptr.hbm [resolvable:$true] %s938_s28 }
  0x22   : > { %v308_v7 = vpack.c.bf16 %v306_v4, %v305_v2  ;;  %v303_v11 = vld [vmem:[%s1055_s2] sm:$0xff]  ;;  %v301_v12 = vpack.c.bf16 %v298_v10, %v297_v9  ;;  %v304_v13 = vld [vmem:[%s1055_s2 + $0x8] sm:$0xff]  ;;  %s943_s27 = sshll.u32 %s1046_s24, 4  ;;  %s945_s20 = sshll.u32 %s388_s13, 4  ;;  %s393_s20 = int_to_ptr.hbm [resolvable:$true] %s945_s20 }
  0x23   : > { %325 = vmatpush.bf16.msra.mxu0 %v302_v3  ;;  %v307_v16 = vpack.c.bf16 %v304_v13, %v303_v11  ;;  %s293_s15 = scalar_lea.vmem %s1056_s0, %s567_s12  ;;  %1057 = sst [smem:[#allocation9_spill]] %s943_s27 }
  0x24   : > { %342 = vmatpush.bf16.msra.mxu1 %v308_v7  ;;  %v295_v18 = vld [vmem:[%s293_s15] sm:$0xff]  ;;  %s936_s15 = sshll.u32 %s279_s14, 4  ;;  %s418_s11 = scalar_lea.hbm %s1043_s6, %s574_s17  ;;  %s406_s15 = int_to_ptr.vmem [resolvable:$true] %s936_s15 }
  0x25   : > { %v296_v19 = vpack.c.bf16 %v295_v18, %v295_v18  ;;  %s1048_s12 = scalar_lea.vmem [#allocation6], %s922_s18  ;;  %s960_s16 = sshll.u32 %s418_s11, 4  ;;  %s423_s16 = int_to_ptr.hbm [resolvable:$true] %s960_s16 }
  0x26   : > { %s958_s13 = sshll.u32 %s1048_s12, 4  ;;  %s372_s24 = scalar_lea.sflag [#allocation5], %s927_s19  ;;  %s421_s13 = int_to_ptr.vmem [resolvable:$true] %s958_s13 }
  0x27   : > { %326 = vmatpush.bf16.msra.mxu0 %v301_v12  ;;  %570 = vmatmul.msk.bf16.vlgmr.msra.gmra.mxu2 %vm315_vm0, %v296_v19  ;;  %s658_s0 = sshra.s32 %s408_s28, 4  ;;  %s664_s8 = scalar_lea.hbm %s1042_s5, 8  ;;  %s659_s0 = int_to_ptr.hbm [resolvable:$true] %s658_s0 }
  0x28   : > { %343 = vmatpush.bf16.msra.mxu1 %v307_v16  ;;  %s660_s1 = scalar_lea.hbm %s659_s0, 4  ;;  %p665_p1 = scmp.lt.s32.totalorder %s659_s0, %s1042_s5 }
  0x29   : > { %p661_p12 = scmp.ne.s32.totalorder %s659_s0, %s660_s1  ;;  %p666_p2 = scmp.lt.s32.totalorder %s664_s8, %s660_s1 }
  0x2a   : > { %568 = vmatmul.msk.bf16.vlgmr.msra.gmra.mxu0 %vm315_vm0, %v296_v19 }
  0x2b   : > { %569 = vmatmul.msk.bf16.vlgmr.msra.gmra.mxu1 %vm315_vm0, %v296_v19  ;;  %p662_p13 = pnand %p661_p12, %p861_p4  ;;  %p667_p3 = por %p666_p2, %p665_p1 }
  0x2d   : > { %p663_p0 = pneg %p662_p13 }
  0x2f   : > { %p668_p5 = pnand %p667_p3, %p663_p0 }
  0xa7   : > { %v328_v20 = vpop.f32.mrf.mxu0 }
  0xa8   : > { %v332_v21 = vmul.f32 0.17677669, %v328_v20  ;;  %v345_v22 = vpop.f32.mrf.mxu1 }
  0xa9   : > { %v349_v23 = vpack.c.bf16 %v345_v22, %v345_v22 }
  0xaa   : > { %v333_v24 = vpack.c.bf16 %v332_v21, %v332_v21 }
  0xab   : > { %350 = vst.msk [vmem:[%s279_s14] sm:$0xf] %vm334_vm1, %v349_v23 }
  0xac   : > { %671 = shalt.err (!%p668_p5)
}
  0xad   : > { %580 = dma.vmem_to_hbm [thread:$0]  (%p861_p4), %s406_s15, 64, %s408_s28, %s372_s24  }
  0xae   : > { %s1058_s11 = scalar_lea.vmem [#allocation2], %s922_s18  ;;  %s1059_s17 = sand.u32 1, %s766_s22  }
  0xaf   : > { %335 = vst.msk [vmem:[%s1058_s11] sm:$0xf] %vm334_vm1, %v333_v24  ;;  %s367_s30 = scalar_lea.sflag [#allocation3], %s1059_s17  ;;  %s686_s0 = sshra.s32 %s393_s20, 4  ;;  %s687_s0 = int_to_ptr.hbm [resolvable:$true] %s686_s0 }
  0xb0   : > { %s688_s1 = scalar_lea.hbm %s687_s0, 4  ;;  %s692_s14 = scalar_lea.hbm %s1041_s4, 8 }
  0xb1   : > { %p689_p6 = scmp.ne.s32.totalorder %s687_s0, %s688_s1  ;;  %p693_p10 = scmp.lt.s32.totalorder %s687_s0, %s1041_s4 }
  0xb2   : > { %p694_p11 = scmp.lt.s32.totalorder %s692_s14, %s688_s1 }
  0xb3   : > { %p690_p7 = pnand %p689_p6, %p861_p4 }
  0xb4   : > { %p695_p12 = por %p694_p11, %p693_p10 }
  0xb5   : > { %p691_p9 = pneg %p690_p7 }
  0xb7   : > { %p696_p13 = pnand %p695_p12, %p691_p9 }
  0xb9   : > { %699 = shalt.err (!%p696_p13)
}
  0xba   : > { %s1060_s28 = sld [smem:[#allocation9_spill]]  ;;  %v360_v25 = vpop.f32.mrf.mxu2  ;;  %v330_v27 = vpop.f32.mrf.mxu0  ;;  %s1062_s2 = scalar_lea.vmem [#allocation6], %s922_s18 }
  0xbb   : > { %v364_v26 = vpack.c.bf16 %v360_v25, %v360_v25  ;;  %v347_v28 = vpop.f32.mrf.mxu1  ;;  %s714_s12 = sshra.s32 %s423_s16, 4  ;;  %s715_s12 = int_to_ptr.hbm [resolvable:$true] %s714_s12 }
  0xbc   : > { %s716_s11 = scalar_lea.hbm %s715_s12, 4  ;;  %p721_p3 = scmp.lt.s32.totalorder %s715_s12, %s1043_s6 }
  0xbd   : > { %365 = vst.msk [vmem:[%s1062_s2] sm:$0xf] %vm334_vm1, %v364_v26  ;;  %p717_p0 = scmp.ne.s32.totalorder %s715_s12, %s716_s11 }
  0xbf   : > { %p718_p1 = pnand %p717_p0, %p861_p4 }
  0xc0   : > { %s1061_s15 = int_to_ptr.vmem [resolvable:$true] %s1060_s28 }
  0xc1   : > { %579 = dma.vmem_to_hbm [thread:$0]  (%p861_p4), %s1061_s15, 64, %s393_s20, %s367_s30  }
  0xc2   : > { %p719_p2 = pneg %p718_p1  ;;  %s720_s20 = scalar_lea.hbm %s1043_s6, 8 }
  0xc3   : > { %p722_p5 = scmp.lt.s32.totalorder %s720_s20, %s716_s11 }
  0xc5   : > { %p723_p6 = por %p722_p5, %p721_p3 }
  0xc7   : > { %p724_p7 = pnand %p723_p6, %p719_p2 }
  0xc9   : > { %727 = shalt.err (!%p724_p7)
}
  0xca   : > { %581 = dma.vmem_to_hbm [thread:$0]  (%p861_p4), %s421_s13, 64, %s423_s16, %s372_s24   ;;  %v362_v29 = vpop.f32.mrf.mxu2 }
  0xcb PF: > { %p595_p9 = scmp.ge.s32.totalorder %s782_s26, 2  ;;  %s434_s18 = sand.u32 1, %s762_s21  }
  0xcc   : > { %s435_s27 = scalar_lea.sflag [#allocation3], %s434_s18 }
  0xcd   : > { %p586_p10 = pnand %p595_p9, %p870_p8 }
  0xcf   : > { %p587_p11 = pneg %p586_p10 }
  0xd1   : > { %753 = dma.done.wait (%p587_p11), %s435_s27, 64  }
  0xd2   : > { %755 = vsyncadd (%p587_p11), %s435_s27, 4294967232  ;;  %s1063_s8 = sadd.s32 4294967294, %s782_s26  }
  0xd3   : > { %s444_s14 = sand.u32 1, %s1063_s8  }
  0xd4   : > { %s445_s7 = scalar_lea.sflag [#allocation5], %s444_s14 }
  0xd5   : > { %757 = dma.done.wait (%p587_p11), %s445_s7, 128  }
  0xd6   : > { %759 = vsyncadd (%p587_p11), %s445_s7, 4294967168  ;;  %s23_s26 = sadd.s32 1, %s782_s26   ;;  %s1064_s21 = smov %s766_s22 }
  0xd7   : > { %p20_p4 = scmp.ge.s32.totalorder %s23_s26, 4   ;;  %s1065_s22 = smov %s770_s23 }
  0xd8   : > { %s1066_s23 = smov %s876_s10  ;;  %s1067_s24 = smov %s778_s25 }
  0xd9   : > { %s1068_s25 = smov %s1070_s29  ;;  %22 = sbr.rel (!%p20_p4) target bundleno = 10 (0xa), region = 103 }
  0xde   :  { %461 = vsyncpa [#allocation3], 1 }
  0xdf   :  { %463 = vsyncpa [#allocation3 + $0x1], 1 }
  0xe0   :  { %464 = vsyncpa [#allocation5], 1 }
  0xe1   :  { %466 = vsyncpa [#allocation5 + $0x1], 1 }

</bundles_post_ra>
